<compile_context>
chip_gen: v7x
topology: tpu7x:2x2x1
jax: 0.10.0
libtpu: 0.0.40
codegen_flags: <defaults>
</compile_context>

<pallas_src>
import functools

import jax
import jax.numpy as jnp
from jax.experimental import pallas as pl
from jax.experimental.pallas import tpu as pltpu


def _round_up(n, m):
    return ((n + m - 1) // m) * m


def _alma_kernel(x_ref, w1_ref, b1_ref, w2_ref, b2_ref, wh_ref, bh_ref,
                 out_ref):
    """One batch tile: fc1+ReLU -> fc2+ReLU -> fused (action||value) head."""
    wdt = w1_ref.dtype                      # f32 (exact) or bf16 (fast) path
    x = x_ref[...].astype(wdt)

    # fc1 + ReLU (f32 accumulation on the MXU; bias add / max are VPU filler)
    h1 = jnp.dot(x, w1_ref[...], preferred_element_type=jnp.float32) + b1_ref[...]
    h1 = jnp.maximum(h1, 0.0)

    # fc2 + ReLU
    h2 = jnp.dot(h1.astype(wdt), w2_ref[...],
                 preferred_element_type=jnp.float32) + b2_ref[...]
    h2 = jnp.maximum(h2, 0.0)

    # fused (action_head || value_head), zero-padded to 128 output lanes:
    # one MXU pass and a lane-dense unmasked store.
    out_ref[...] = (jnp.dot(h2.astype(wdt), wh_ref[...],
                            preferred_element_type=jnp.float32)
                    + bh_ref[...]).astype(out_ref.dtype)


def prepare_params(params, *, compute_dtype=jnp.float32):
    """One-time packing of module params for the kernel.

    Fuses action_head/value_head into a single lane-dense (H, 128) matmul and
    optionally casts matmul weights to bf16.  Call once at init so the
    pad/scatter and extra HBM round trip stay off the forward critical path.
    """
    w1, b1, w2, b2 = params["w1"], params["b1"], params["w2"], params["b2"]
    wa, ba, wv, bv = params["wa"], params["ba"], params["wv"], params["bv"]
    H = w1.shape[1]
    A = wa.shape[1]
    V = wv.shape[1]
    P = max(128, _round_up(A + V, 128))

    wh = jnp.zeros((H, P), jnp.float32).at[:, :A].set(wa).at[:, A:A + V].set(wv)
    bh = jnp.zeros((1, P), jnp.float32).at[:, :A].set(ba).at[:, A:A + V].set(bv)

    prepared = dict(
        w1=w1.astype(compute_dtype), b1=b1.astype(jnp.float32),
        w2=w2.astype(compute_dtype), b2=b2.astype(jnp.float32),
        wh=wh.astype(compute_dtype), bh=bh.astype(jnp.float32),
    )
    return prepared, (A, V, P)


@functools.partial(jax.jit, static_argnames=("action_dim", "value_dim", "tb"))
def alma_policy_forward(x, prepared, *, action_dim, value_dim=1, tb=1024):
    """x: [B, input_dim]. Returns (actions [B, action_dim], value [B, value_dim])."""
    B, D = x.shape
    w1, b1 = prepared["w1"], prepared["b1"]
    w2, b2 = prepared["w2"], prepared["b2"]
    wh, bh = prepared["wh"], prepared["bh"]
    H = w1.shape[1]
    P = wh.shape[1]

    # ---- batch tile selection ----------------------------------------------
    # TB defaults to 1024 (multiple of 256).  No jnp.pad of x: the grid is
    # cdiv(B, TB) and Pallas masks the ragged boundary block.
    TB = min(tb, _round_up(B, 8))           # never exceed the (8-rounded) batch
    if B >= 512:
        # v7x has 2 TensorCores: keep >= 2 "parallel" grid steps so both work.
        TB = min(TB, _round_up(pl.cdiv(B, 2), 256))
    TB = max(TB, 8)
    n_tiles = pl.cdiv(B, TB)

    itemsize = x.dtype.itemsize
    flops = 2 * B * (D * H + H * H + H * P)
    bytes_accessed = (
        B * D * itemsize + B * P * 4
        + sum(a.size * a.dtype.itemsize for a in (w1, b1, w2, b2, wh, bh)))

    out = pl.pallas_call(
        _alma_kernel,
        out_shape=jax.ShapeDtypeStruct((B, P), jnp.float32),
        grid=(n_tiles,),
        in_specs=[
            pl.BlockSpec((TB, D), lambda i: (i, 0)),   # x: batch-tiled, pipelined
            pl.BlockSpec((D, H), lambda i: (0, 0)),    # w1: VMEM-resident
            pl.BlockSpec((1, H), lambda i: (0, 0)),    # b1: VMEM-resident
            pl.BlockSpec((H, H), lambda i: (0, 0)),    # w2: VMEM-resident
            pl.BlockSpec((1, H), lambda i: (0, 0)),    # b2: VMEM-resident
            pl.BlockSpec((H, P), lambda i: (0, 0)),    # fused head W: resident
            pl.BlockSpec((1, P), lambda i: (0, 0)),    # fused head b: resident
        ],
        out_specs=pl.BlockSpec((TB, P), lambda i: (i, 0)),
        compiler_params=pltpu.CompilerParams(
            dimension_semantics=("parallel",),
            # TB<=1024 -> ~8 MiB per call; raise vmem_limit_bytes only if TB
            # is pushed to 2048 on v5e (16 MiB default scoped VMEM).
        ),
        cost_estimate=pl.CostEstimate(
            flops=flops, transcendentals=0, bytes_accessed=bytes_accessed),
    )(x, w1, b1, w2, b2, wh, bh)

    # These slices fuse into this jit (no extra HBM pass over the padded out).
    return out[:, :action_dim], out[:, action_dim:action_dim + value_dim]


def init_params(key, input_dim=512, hidden_dim=128, action_dim=4):
    """Deterministic init mimicking PyTorch nn.Linear default U[-1/sqrt(fan_in), .]."""
    def linear(k, fan_in, fan_out):
        kw, kb = jax.random.split(k)
        bound = 1.0 / jnp.sqrt(fan_in)
        w = jax.random.uniform(kw, (fan_in, fan_out), jnp.float32, -bound, bound)
        b = jax.random.uniform(kb, (1, fan_out), jnp.float32, -bound, bound)
        return w, b

    k1, k2, k3, k4 = jax.random.split(key, 4)
    w1, b1 = linear(k1, input_dim, hidden_dim)
    w2, b2 = linear(k2, hidden_dim, hidden_dim)
    wa, ba = linear(k3, hidden_dim, action_dim)
    wv, bv = linear(k4, hidden_dim, 1)
    return dict(w1=w1, b1=b1, w2=w2, b2=b2, wa=wa, ba=ba, wv=wv, bv=bv)


def reference_forward(x, p):
    h1 = jnp.maximum(x @ p["w1"] + p["b1"], 0.0)
    h2 = jnp.maximum(h1 @ p["w2"] + p["b2"], 0.0)
    return h2 @ p["wa"] + p["ba"], h2 @ p["wv"] + p["bv"]


if __name__ == "__main__":
    key = jax.random.PRNGKey(0)
    kp, kx1, kx2 = jax.random.split(key, 3)

    INPUT_DIM, HIDDEN_DIM, ACTION_DIM = 512, 128, 4
    params = init_params(kp, INPUT_DIM, HIDDEN_DIM, ACTION_DIM)

    # Head fusion / padding happens ONCE here, off the forward critical path.
    prepared_f32, _ = prepare_params(params)

    # --- small batch: single boundary-masked tile, exact f32 parity --------
    B1 = 8
    x1 = jax.random.normal(kx1, (B1, INPUT_DIM), jnp.float32)
    a1, v1 = alma_policy_forward(x1, prepared_f32, action_dim=ACTION_DIM)
    a1 = jax.block_until_ready(a1)
    v1 = jax.block_until_ready(v1)
    ra1, rv1 = reference_forward(x1, params)
    assert a1.shape == (B1, ACTION_DIM) and v1.shape == (B1, 1)
    assert jnp.allclose(a1, ra1, atol=1e-4, rtol=1e-4)
    assert jnp.allclose(v1, rv1, atol=1e-4, rtol=1e-4)

    # --- ragged multi-tile batch (no jnp.pad; Pallas masks the last block) --
    B2 = 300
    x2 = jax.random.normal(kx2, (B2, INPUT_DIM), jnp.float32)
    a2, v2 = alma_policy_forward(x2, prepared_f32, action_dim=ACTION_DIM, tb=128)
    a2 = jax.block_until_ready(a2)
    v2 = jax.block_until_ready(v2)
    ra2, rv2 = reference_forward(x2, params)
    assert a2.shape == (B2, ACTION_DIM) and v2.shape == (B2, 1)
    assert jnp.allclose(a2, ra2, atol=1e-4, rtol=1e-4)
    assert jnp.allclose(v2, rv2, atol=1e-4, rtol=1e-4)

    # --- optional bf16-operand path (biggest throughput lever, looser tol) --
    prepared_bf16, _ = prepare_params(params, compute_dtype=jnp.bfloat16)
    a3, v3 = alma_policy_forward(x2, prepared_bf16, action_dim=ACTION_DIM)
    a3 = jax.block_until_ready(a3)
    v3 = jax.block_until_ready(v3)
    assert a3.shape == (B2, ACTION_DIM) and v3.shape == (B2, 1)
    assert jnp.allclose(a3, ra2, atol=5e-2, rtol=5e-2)
    assert jnp.allclose(v3, rv2, atol=5e-2, rtol=5e-2)

    print("KERNEL_OK")
</pallas_src>

<mosaic_0001>
module attributes {stable_mosaic.version = 11 : i64} {
  func.func @_alma_kernel(%arg0: i32, %arg1: memref<8x512xf32, #tpu.memory_space<vmem>>, %arg2: memref<512x128xf32, #tpu.memory_space<vmem>>, %arg3: memref<1x128xf32, #tpu.memory_space<vmem>>, %arg4: memref<128x128xf32, #tpu.memory_space<vmem>>, %arg5: memref<1x128xf32, #tpu.memory_space<vmem>>, %arg6: memref<128x128xf32, #tpu.memory_space<vmem>>, %arg7: memref<1x128xf32, #tpu.memory_space<vmem>>, %arg8: memref<8x128xf32, #tpu.memory_space<vmem>>) attributes {dimension_semantics = [#tpu.dimension_semantics<parallel>], iteration_bounds = array<i64: 1>, scalar_prefetch = 0 : i64, scratch_operands = 0 : i64, tpu.core_type = #tpu.core_type<tc>, window_params = [{transform_indices = @transform_0, window_bounds = array<i64: 8, 512>}, {pipeline_mode = #tpu.pipeline_mode<synchronous>, transform_indices = @transform_1, window_bounds = array<i64: 512, 128>}, {pipeline_mode = #tpu.pipeline_mode<synchronous>, transform_indices = @transform_2, window_bounds = array<i64: 1, 128>}, {pipeline_mode = #tpu.pipeline_mode<synchronous>, transform_indices = @transform_3, window_bounds = array<i64: 128, 128>}, {pipeline_mode = #tpu.pipeline_mode<synchronous>, transform_indices = @transform_4, window_bounds = array<i64: 1, 128>}, {pipeline_mode = #tpu.pipeline_mode<synchronous>, transform_indices = @transform_5, window_bounds = array<i64: 128, 128>}, {pipeline_mode = #tpu.pipeline_mode<synchronous>, transform_indices = @transform_6, window_bounds = array<i64: 1, 128>}, {transform_indices = @transform_7, window_bounds = array<i64: 8, 128>}]} {
    %c0 = arith.constant 0 : index
    %c0_0 = arith.constant 0 : index
    %0 = vector.load %arg1[%c0, %c0_0] : memref<8x512xf32, #tpu.memory_space<vmem>>, vector<8x512xf32>
    %c0_1 = arith.constant 0 : index
    %c0_2 = arith.constant 0 : index
    %1 = vector.load %arg2[%c0_1, %c0_2] : memref<512x128xf32, #tpu.memory_space<vmem>>, vector<512x128xf32>
    %cst = arith.constant dense<0.000000e+00> : vector<8x128xf32>
    %2 = tpu.matmul %0, %1, %cst {dimension_numbers = #tpu.dot_dimension_numbers<[1], [0], [0], [1], [0, 0, 1, 1], [], []>} : vector<8x512xf32>, vector<512x128xf32>, vector<8x128xf32> -> vector<8x128xf32>
    %c0_3 = arith.constant 0 : index
    %c0_4 = arith.constant 0 : index
    %3 = vector.load %arg3[%c0_3, %c0_4] : memref<1x128xf32, #tpu.memory_space<vmem>>, vector<1x128xf32>
    %4 = vector.broadcast %3 : vector<1x128xf32> to vector<8x128xf32>
    %5 = arith.addf %2, %4 : vector<8x128xf32>
    %cst_5 = arith.constant 0.000000e+00 : f32
    %6 = vector.broadcast %cst_5 : f32 to vector<8x128xf32>
    %7 = arith.maximumf %5, %6 : vector<8x128xf32>
    %c0_6 = arith.constant 0 : index
    %c0_7 = arith.constant 0 : index
    %8 = vector.load %arg4[%c0_6, %c0_7] : memref<128x128xf32, #tpu.memory_space<vmem>>, vector<128x128xf32>
    %cst_8 = arith.constant dense<0.000000e+00> : vector<8x128xf32>
    %9 = tpu.matmul %7, %8, %cst_8 {dimension_numbers = #tpu.dot_dimension_numbers<[1], [0], [0], [1], [0, 0, 1, 1], [], []>} : vector<8x128xf32>, vector<128x128xf32>, vector<8x128xf32> -> vector<8x128xf32>
    %c0_9 = arith.constant 0 : index
    %c0_10 = arith.constant 0 : index
    %10 = vector.load %arg5[%c0_9, %c0_10] : memref<1x128xf32, #tpu.memory_space<vmem>>, vector<1x128xf32>
    %11 = vector.broadcast %10 : vector<1x128xf32> to vector<8x128xf32>
    %12 = arith.addf %9, %11 : vector<8x128xf32>
    %cst_11 = arith.constant 0.000000e+00 : f32
    %13 = vector.broadcast %cst_11 : f32 to vector<8x128xf32>
    %14 = arith.maximumf %12, %13 : vector<8x128xf32>
    %c0_12 = arith.constant 0 : index
    %c0_13 = arith.constant 0 : index
    %15 = vector.load %arg6[%c0_12, %c0_13] : memref<128x128xf32, #tpu.memory_space<vmem>>, vector<128x128xf32>
    %cst_14 = arith.constant dense<0.000000e+00> : vector<8x128xf32>
    %16 = tpu.matmul %14, %15, %cst_14 {dimension_numbers = #tpu.dot_dimension_numbers<[1], [0], [0], [1], [0, 0, 1, 1], [], []>} : vector<8x128xf32>, vector<128x128xf32>, vector<8x128xf32> -> vector<8x128xf32>
    %c0_15 = arith.constant 0 : index
    %c0_16 = arith.constant 0 : index
    %17 = vector.load %arg7[%c0_15, %c0_16] : memref<1x128xf32, #tpu.memory_space<vmem>>, vector<1x128xf32>
    %18 = vector.broadcast %17 : vector<1x128xf32> to vector<8x128xf32>
    %19 = arith.addf %16, %18 : vector<8x128xf32>
    %c0_17 = arith.constant 0 : index
    %c0_18 = arith.constant 0 : index
    %20 = vector.load %arg8[%c0_17, %c0_18] : memref<8x128xf32, #tpu.memory_space<vmem>>, vector<8x128xf32>
    tpu.vector_store %arg8[%c0_17, %c0_18], %19 {strides = array<i32>} : memref<8x128xf32, #tpu.memory_space<vmem>>, vector<8x128xf32>,
    return
  }
  func.func @transform_0(%arg0: i32) -> (i32, i32) {
    %c0_i32 = arith.constant 0 : i32
    %c0_i32_0 = arith.constant 0 : i32
    return %arg0, %c0_i32 : i32, i32
  }
  func.func @transform_1(%arg0: i32) -> (i32, i32) {
    %c0_i32 = arith.constant 0 : i32
    %c0_i32_0 = arith.constant 0 : i32
    %c0_i32_1 = arith.constant 0 : i32
    return %c0_i32, %c0_i32_0 : i32, i32
  }
  func.func @transform_2(%arg0: i32) -> (i32, i32) {
    %c0_i32 = arith.constant 0 : i32
    %c0_i32_0 = arith.constant 0 : i32
    %c0_i32_1 = arith.constant 0 : i32
    return %c0_i32, %c0_i32_0 : i32, i32
  }
  func.func @transform_3(%arg0: i32) -> (i32, i32) {
    %c0_i32 = arith.constant 0 : i32
    %c0_i32_0 = arith.constant 0 : i32
    %c0_i32_1 = arith.constant 0 : i32
    return %c0_i32, %c0_i32_0 : i32, i32
  }
  func.func @transform_4(%arg0: i32) -> (i32, i32) {
    %c0_i32 = arith.constant 0 : i32
    %c0_i32_0 = arith.constant 0 : i32
    %c0_i32_1 = arith.constant 0 : i32
    return %c0_i32, %c0_i32_0 : i32, i32
  }
  func.func @transform_5(%arg0: i32) -> (i32, i32) {
    %c0_i32 = arith.constant 0 : i32
    %c0_i32_0 = arith.constant 0 : i32
    %c0_i32_1 = arith.constant 0 : i32
    return %c0_i32, %c0_i32_0 : i32, i32
  }
  func.func @transform_6(%arg0: i32) -> (i32, i32) {
    %c0_i32 = arith.constant 0 : i32
    %c0_i32_0 = arith.constant 0 : i32
    %c0_i32_1 = arith.constant 0 : i32
    return %c0_i32, %c0_i32_0 : i32, i32
  }
  func.func @transform_7(%arg0: i32) -> (i32, i32) {
    %c0_i32 = arith.constant 0 : i32
    %c0_i32_0 = arith.constant 0 : i32
    return %arg0, %c0_i32 : i32, i32
  }
}

</mosaic_0001>

<bundles_post_ra>
// kernel: alma_policy_forward.1
= control target key start
LH: loop header
LB: loop body
LE: loop exit
PB: predicated region body
PF: predicated region fallthrough
CT: control target
= control target key end

     0   :  { %12 = vsyncpa [#allocation3], 0  ;;  %s1016_s0 = inlined_call_operand.hbm [shape: f32[8,512], index: 0, kind: input, shape index: {}]   ;;  %s1017_s1 = inlined_call_operand.hbm [shape: f32[512,128], index: 1, kind: input, shape index: {}]   ;;  %s1018_s2 = inlined_call_operand.vmem [shape: f32[1,128], index: 2, kind: input, shape index: {}]   ;;  %s1019_s3 = inlined_call_operand.hbm [shape: f32[128,128], index: 3, kind: input, shape index: {}]   ;;  %s1020_s4 = inlined_call_operand.vmem [shape: f32[1,128], index: 4, kind: input, shape index: {}]   ;;  %s1021_s5 = inlined_call_operand.hbm [shape: f32[128,128], index: 5, kind: input, shape index: {}]   ;;  %s1022_s6 = inlined_call_operand.vmem [shape: f32[1,128], index: 6, kind: input, shape index: {}]   ;;  %s1023_s7 = inlined_call_operand.vmem [shape: f32[8,128], index: 7, kind: output, shape index: {}]  }
   0x1   :  { %13 = vsyncpa [#allocation5], 0 }
   0x2   :  { %14 = vsyncpa [#allocation8], 0  ;;  %s882_s24 = smov [#allocation4]   ;;  %s788_s28 = scalar_lea.hbm %s1017_s1, 8192 }
   0x3   :  { %s30_s25 = sshll.u32 %s882_s24, 4  ;;  %p789_p0 = scmp.ne.s32.totalorder %s1017_s1, %s788_s28  ;;  %s31_s25 = int_to_ptr.vmem [resolvable:$true] %s30_s25 }
   0x4   :  { %p792_p1 = scmp.lt.u32.totalorder %s788_s28, %s1017_s1 }
   0x6   :  { %p794_p2 = pnand %p792_p1, %p789_p0 }
   0x8   :  { %797 = shalt.err (!%p794_p2)
}
   0x9   :  { %s798_s10 = scalar_lea.vmem %s31_s25, 8192  ;;  %p803_p4 = scmp.lt.s32.totalorder %s31_s25, %s31_s25 }
   0xa   :  { %p799_p3 = scmp.ne.s32.totalorder %s31_s25, %s798_s10  ;;  %p804_p5 = scmp.lt.s32.totalorder %s798_s10, %s798_s10 }
   0xc   :  { %p805_p6 = por %p804_p5, %p803_p4 }
   0xe   :  { %p806_p7 = pnand %p805_p6, %p799_p3 }
  0x10   :  { %809 = shalt.err (!%p806_p7)
}
  0x11   :  { %s883_s11 = smov 128   ;;  %s884_s12 = smov 8  }
  0x12   :  { %36 = dma.hbm_to_vmem [thread:$0]  %s1017_s1, 8192, %s31_s25, [#allocation5], %s883_s11, %s883_s11, %s884_s12  }
  0x13   :  { %s885_s15 = smov [#allocation2]   ;;  %s886_s17 = smov [#allocation6]  }
  0x14   :  { %s21_s16 = sshll.u32 %s885_s15, 4  ;;  %s44_s18 = sshll.u32 %s886_s17, 4  ;;  %s22_s16 = int_to_ptr.vmem [resolvable:$true] %s21_s16  ;;  %s45_s18 = int_to_ptr.vmem [resolvable:$true] %s44_s18 }
  0x15   :  { %s810_s21 = scalar_lea.hbm %s1016_s0, 512 }
  0x16   :  { %p811_p8 = scmp.ne.s32.totalorder %s1016_s0, %s810_s21  ;;  %p814_p9 = scmp.lt.u32.totalorder %s810_s21, %s1016_s0 }
  0x18   :  { %p816_p10 = pnand %p814_p9, %p811_p8 }
  0x1a   :  { %819 = shalt.err (!%p816_p10)
}
  0x1b   :  { %s820_s1 = scalar_lea.vmem %s22_s16, 512  ;;  %p825_p12 = scmp.lt.s32.totalorder %s22_s16, %s22_s16 }
  0x1c   :  { %p821_p11 = scmp.ne.s32.totalorder %s22_s16, %s820_s1  ;;  %p826_p13 = scmp.lt.s32.totalorder %s820_s1, %s820_s1 }
  0x1e   :  { %p827_p0 = por %p826_p13, %p825_p12 }
  0x20   :  { %p828_p1 = pnand %p827_p0, %p821_p11 }
  0x22   :  { %831 = shalt.err (!%p828_p1)
}
  0x23   :  { %24 = dma.hbm_to_vmem [thread:$0]  %s1016_s0, 512, %s22_s16, [#allocation3]  }
  0x24   :  { %s832_s30 = scalar_lea.hbm %s1019_s3, 2048 }
  0x25   :  { %p833_p2 = scmp.ne.s32.totalorder %s1019_s3, %s832_s30  ;;  %p836_p3 = scmp.lt.u32.totalorder %s832_s30, %s1019_s3 }
  0x27   :  { %p838_p4 = pnand %p836_p3, %p833_p2 }
  0x29   :  { %841 = shalt.err (!%p838_p4)
}
  0x2a   :  { %s842_s14 = scalar_lea.vmem %s45_s18, 2048  ;;  %p847_p6 = scmp.lt.s32.totalorder %s45_s18, %s45_s18 }
  0x2b   :  { %p843_p5 = scmp.ne.s32.totalorder %s45_s18, %s842_s14  ;;  %p848_p7 = scmp.lt.s32.totalorder %s842_s14, %s842_s14 }
  0x2d   :  { %p849_p8 = por %p848_p7, %p847_p6 }
  0x2f   :  { %p850_p9 = pnand %p849_p8, %p843_p5 }
  0x31   :  { %853 = shalt.err (!%p850_p9)
}
  0x32   :  { %50 = dma.hbm_to_vmem [thread:$0]  %s1019_s3, 2048, %s45_s18, [#allocation5], %s883_s11, %s883_s11, %s884_s12  }
  0x33   :  { %s887_s16 = smov [#allocation7]   ;;  %s854_s21 = scalar_lea.hbm %s1021_s5, 2048 }
  0x34   :  { %s58_s17 = sshll.u32 %s887_s16, 4  ;;  %p855_p10 = scmp.ne.s32.totalorder %s1021_s5, %s854_s21  ;;  %s59_s17 = int_to_ptr.vmem [resolvable:$true] %s58_s17 }
  0x35   :  { %p858_p11 = scmp.lt.u32.totalorder %s854_s21, %s1021_s5 }
  0x37   :  { %p860_p12 = pnand %p858_p11, %p855_p10 }
  0x39   :  { %863 = shalt.err (!%p860_p12)
}
  0x3a   :  { %s864_s1 = scalar_lea.vmem %s59_s17, 2048  ;;  %p869_p0 = scmp.lt.s32.totalorder %s59_s17, %s59_s17 }
  0x3b   :  { %p865_p13 = scmp.ne.s32.totalorder %s59_s17, %s864_s1  ;;  %p870_p1 = scmp.lt.s32.totalorder %s864_s1, %s864_s1 }
  0x3d   :  { %p871_p2 = por %p870_p1, %p869_p0 }
  0x3f   :  { %p872_p3 = pnand %p871_p2, %p865_p13 }
  0x41   :  { %875 = shalt.err (!%p872_p3)
}
  0x42   :  { %64 = dma.hbm_to_vmem [thread:$0]  %s1021_s5, 2048, %s59_s17, [#allocation8], %s883_s11, %s883_s11, %s884_s12  }
  0x43   :  { %876 = dma.done.wait [#allocation3], 512  }
  0x44   :  { %877 = vsyncadd [#allocation3], 4294966784 }
  0x45   :  { %878 = dma.done.wait [#allocation5], 10240  }
  0x46   :  { %879 = vsyncadd [#allocation5], 4294957056 }
  0x47   :  { %880 = dma.done.wait [#allocation8], 2048  }
  0x48   :  { %881 = vsyncadd [#allocation8], 4294965248  ;;  %v99_v0 = vld [vmem:[#allocation4 + $0x80] sm:$0xff]  ;;  %v100_v1 = vld [vmem:[#allocation4 + $0x88] sm:$0xff]  ;;  %vm889_vm0 = vmmov 0  }
  0x49   :  { %v83_v2 = vld [vmem:[#allocation4] sm:$0xff]  ;;  %v667_v3 = vpack.c.bf16 %v100_v1, %v99_v0  ;;  %v84_v4 = vld [vmem:[#allocation4 + $0x8] sm:$0xff]  ;;  %v101_v11 = vld [vmem:[#allocation4 + $0x90] sm:$0xff] }
  0x4a   :  { %v131_v5 = vld [vmem:[#allocation4 + $0x180] sm:$0xff]  ;;  %v132_v6 = vld [vmem:[#allocation4 + $0x188] sm:$0xff]  ;;  %v669_v7 = vpack.c.bf16 %v84_v4, %v83_v2  ;;  %v102_v13 = vld [vmem:[#allocation4 + $0x98] sm:$0xff] }
  0x4b   :  { %v699_v8 = vpack.c.bf16 %v132_v6, %v131_v5  ;;  %v115_v9 = vld [vmem:[#allocation4 + $0x100] sm:$0xff]  ;;  %v116_v10 = vld [vmem:[#allocation4 + $0x108] sm:$0xff]  ;;  %668 = vmatprep.subr.bf16.mxu0 %v667_v3  ;;  %v85_v14 = vld [vmem:[#allocation4 + $0x10] sm:$0xff]  ;;  %v671_v16 = vpack.c.bf16 %v102_v13, %v101_v11 }
  0x4c   :  { %v701_v12 = vpack.c.bf16 %v116_v10, %v115_v9  ;;  %v86_v15 = vld [vmem:[#allocation4 + $0x18] sm:$0xff]  ;;  %670 = vmatpush3.bf16.msra.mxu0 %v669_v7  ;;  %v133_v18 = vld [vmem:[#allocation4 + $0x190] sm:$0xff]  ;;  %v103_v23 = vld [vmem:[#allocation4 + $0xa0] sm:$0xff] }
  0x4d   :  { %700 = vmatprep.subr.bf16.mxu1 %v699_v8  ;;  %v673_v17 = vpack.c.bf16 %v86_v15, %v85_v14  ;;  %v134_v19 = vld [vmem:[#allocation4 + $0x198] sm:$0xff]  ;;  %v117_v20 = vld [vmem:[#allocation4 + $0x110] sm:$0xff]  ;;  %v104_v24 = vld [vmem:[#allocation4 + $0xa8] sm:$0xff]  ;;  %672 = vmatprep.subr.bf16.mxu0 %v671_v16 }
  0x4e   :  { %702 = vmatpush3.bf16.msra.mxu1 %v701_v12  ;;  %v703_v21 = vpack.c.bf16 %v134_v19, %v133_v18  ;;  %v118_v22 = vld [vmem:[#allocation4 + $0x118] sm:$0xff]  ;;  %v675_v26 = vpack.c.bf16 %v104_v24, %v103_v23  ;;  %v87_v27 = vld [vmem:[#allocation4 + $0x20] sm:$0xff]  ;;  %v88_v28 = vld [vmem:[#allocation4 + $0x28] sm:$0xff] }
  0x4f   :  { %v705_v25 = vpack.c.bf16 %v118_v22, %v117_v20  ;;  %v135_v29 = vld [vmem:[#allocation4 + $0x1a0] sm:$0xff]  ;;  %v136_v30 = vld [vmem:[#allocation4 + $0x1a8] sm:$0xff]  ;;  %v677_v33 = vpack.c.bf16 %v88_v28, %v87_v27  ;;  %v105_v35 = vld [vmem:[#allocation4 + $0xb0] sm:$0xff] }
  0x50   :  { %704 = vmatprep.subr.bf16.mxu1 %v703_v21  ;;  %v119_v31 = vld [vmem:[#allocation4 + $0x120] sm:$0xff]  ;;  %v120_v32 = vld [vmem:[#allocation4 + $0x128] sm:$0xff]  ;;  %674 = vmatpush3.bf16.msra.mxu0 %v673_v17  ;;  %v707_v34 = vpack.c.bf16 %v136_v30, %v135_v29  ;;  %v106_v36 = vld [vmem:[#allocation4 + $0xb8] sm:$0xff] }
  0x51   :  { %v89_v37 = vld [vmem:[#allocation4 + $0x30] sm:$0xff]  ;;  %676 = vmatprep.subr.bf16.mxu0 %v675_v26  ;;  %v709_v38 = vpack.c.bf16 %v120_v32, %v119_v31  ;;  %v679_v39 = vpack.c.bf16 %v106_v36, %v105_v35  ;;  %v90_v40 = vld [vmem:[#allocation4 + $0x38] sm:$0xff]  ;;  %v107_v46 = vld [vmem:[#allocation4 + $0xc0] sm:$0xff] }
  0x52   :  { %706 = vmatpush3.bf16.msra.mxu1 %v705_v25  ;;  %v137_v41 = vld [vmem:[#allocation4 + $0x1b0] sm:$0xff]  ;;  %v138_v42 = vld [vmem:[#allocation4 + $0x1b8] sm:$0xff]  ;;  %v108_v47 = vld [vmem:[#allocation4 + $0xc8] sm:$0xff]  ;;  %v681_v48 = vpack.c.bf16 %v90_v40, %v89_v37 }
  0x53   :  { %708 = vmatprep.subr.bf16.mxu1 %v707_v34  ;;  %v711_v43 = vpack.c.bf16 %v138_v42, %v137_v41  ;;  %v121_v44 = vld [vmem:[#allocation4 + $0x130] sm:$0xff]  ;;  %v122_v45 = vld [vmem:[#allocation4 + $0x138] sm:$0xff]  ;;  %v139_v49 = vld [vmem:[#allocation4 + $0x1c0] sm:$0xff]  ;;  %v683_v52 = vpack.c.bf16 %v108_v47, %v107_v46 }
  0x54   :  { %678 = vmatpush3.bf16.msra.mxu0 %v677_v33  ;;  %v140_v50 = vld [vmem:[#allocation4 + $0x1c8] sm:$0xff]  ;;  %v713_v51 = vpack.c.bf16 %v122_v45, %v121_v44  ;;  %v91_v53 = vld [vmem:[#allocation4 + $0x40] sm:$0xff]  ;;  %v109_v58 = vld [vmem:[#allocation4 + $0xd0] sm:$0xff] }
  0x55   :  { %680 = vmatprep.subr.bf16.mxu0 %v679_v39  ;;  %v92_v54 = vld [vmem:[#allocation4 + $0x48] sm:$0xff]  ;;  %v123_v55 = vld [vmem:[#allocation4 + $0x140] sm:$0xff]  ;;  %v715_v56 = vpack.c.bf16 %v140_v50, %v139_v49  ;;  %v110_v59 = vld [vmem:[#allocation4 + $0xd8] sm:$0xff]  ;;  %v888_v39 = vmov 0.0|0.0  }
  0x56   :  { %710 = vmatpush3.bf16.msra.mxu1 %v709_v38  ;;  %v124_v57 = vld [vmem:[#allocation4 + $0x148] sm:$0xff]  ;;  %v141_v60 = vld [vmem:[#allocation4 + $0x1d0] sm:$0xff]  ;;  %v142_v61 = vld [vmem:[#allocation4 + $0x1d8] sm:$0xff]  ;;  %v685_v62 = vpack.c.bf16 %v92_v54, %v91_v53  ;;  %v687_v0 = vpack.c.bf16 %v110_v59, %v109_v58 }
  0x57   :  { %712 = vmatprep.subr.bf16.mxu1 %v711_v43  ;;  %v717_v63 = vpack.c.bf16 %v124_v57, %v123_v55  ;;  %v93_v1 = vld [vmem:[#allocation4 + $0x50] sm:$0xff]  ;;  %v94_v2 = vld [vmem:[#allocation4 + $0x58] sm:$0xff]  ;;  %v719_v4 = vpack.c.bf16 %v142_v61, %v141_v60  ;;  %v111_v6 = vld [vmem:[#allocation4 + $0xe0] sm:$0xff]  ;;  %v890_v61 = vmov 0.0  }
  0x58   :  { %682 = vmatpush3.bf16.msra.mxu0 %v681_v48  ;;  %v125_v3 = vld [vmem:[#allocation4 + $0x150] sm:$0xff]  ;;  %v126_v5 = vld [vmem:[#allocation4 + $0x158] sm:$0xff]  ;;  %v112_v7 = vld [vmem:[#allocation4 + $0xe8] sm:$0xff]  ;;  %v689_v10 = vpack.c.bf16 %v94_v2, %v93_v1 }
  0x59   :  { %684 = vmatprep.subr.bf16.mxu0 %v683_v52  ;;  %v143_v8 = vld [vmem:[#allocation4 + $0x1e0] sm:$0xff]  ;;  %v144_v9 = vld [vmem:[#allocation4 + $0x1e8] sm:$0xff]  ;;  %v721_v13 = vpack.c.bf16 %v126_v5, %v125_v3  ;;  %v691_v14 = vpack.c.bf16 %v112_v7, %v111_v6  ;;  %v113_v19 = vld [vmem:[#allocation4 + $0xf0] sm:$0xff] }
  0x5a   :  { %714 = vmatpush3.bf16.msra.mxu1 %v713_v51  ;;  %v95_v11 = vld [vmem:[#allocation4 + $0x60] sm:$0xff]  ;;  %v96_v12 = vld [vmem:[#allocation4 + $0x68] sm:$0xff]  ;;  %v723_v18 = vpack.c.bf16 %v144_v9, %v143_v8  ;;  %v114_v20 = vld [vmem:[#allocation4 + $0xf8] sm:$0xff] }
  0x5b   :  { %716 = vmatprep.subr.bf16.mxu1 %v715_v56  ;;  %v127_v15 = vld [vmem:[#allocation4 + $0x160] sm:$0xff]  ;;  %v128_v16 = vld [vmem:[#allocation4 + $0x168] sm:$0xff]  ;;  %v82_v21 = vld [vmem:[#allocation2 + $0x18] sm:$0xff]  ;;  %v693_v24 = vpack.c.bf16 %v96_v12, %v95_v11  ;;  %v695_v26 = vpack.c.bf16 %v114_v20, %v113_v19 }
  0x5c   :  { %686 = vmatpush3.bf16.msra.mxu0 %v685_v62  ;;  %v80_v17 = vld [vmem:[#allocation2 + $0x8] sm:$0xff]  ;;  %v145_v22 = vld [vmem:[#allocation4 + $0x1f0] sm:$0xff]  ;;  %v146_v23 = vld [vmem:[#allocation4 + $0x1f8] sm:$0xff]  ;;  %288 = vmatprep.mubr.f32.mxu1 %v82_v21  ;;  %v725_v25 = vpack.c.bf16 %v128_v16, %v127_v15 }
  0x5d   :  { %688 = vmatprep.subr.bf16.mxu0 %v687_v0  ;;  %218 = vmatprep.mubr.f32.mxu0 %v80_v17  ;;  %v97_v27 = vld [vmem:[#allocation4 + $0x70] sm:$0xff]  ;;  %v98_v28 = vld [vmem:[#allocation4 + $0x78] sm:$0xff]  ;;  %v727_v29 = vpack.c.bf16 %v146_v23, %v145_v22  ;;  %v295_v34 = vld [vmem:[#allocation6] sm:$0xff] }
  0x5e   :  { %718 = vmatpush3.bf16.msra.mxu1 %v717_v63  ;;  %v129_v30 = vld [vmem:[#allocation4 + $0x170] sm:$0xff]  ;;  %v130_v31 = vld [vmem:[#allocation4 + $0x178] sm:$0xff]  ;;  %v697_v32 = vpack.c.bf16 %v98_v28, %v97_v27  ;;  %v296_v35 = vld [vmem:[#allocation6 + $0x8] sm:$0xff] }
  0x5f   :  { %720 = vmatprep.subr.bf16.mxu1 %v719_v4  ;;  %v729_v33 = vpack.c.bf16 %v130_v31, %v129_v30  ;;  %v79_v36 = vld [vmem:[#allocation2] sm:$0xff]  ;;  %v732_v37 = vpack.c.bf16 %v296_v35, %v295_v34  ;;  %v81_v38 = vld [vmem:[#allocation2 + $0x10] sm:$0xff]  ;;  %v298_v41 = vld [vmem:[#allocation6 + $0x18] sm:$0xff] }
  0x60   :  { %690 = vmatpush3.bf16.msra.mxu0 %v689_v10  ;;  %v297_v40 = vld [vmem:[#allocation6 + $0x10] sm:$0xff]  ;;  %v299_v43 = vld [vmem:[#allocation6 + $0x20] sm:$0xff]  ;;  %v300_v44 = vld [vmem:[#allocation6 + $0x28] sm:$0xff] }
  0x61   :  { %692 = vmatprep.subr.bf16.mxu0 %v691_v14  ;;  %v735_v42 = vpack.c.bf16 %v298_v41, %v297_v40  ;;  %v738_v45 = vpack.c.bf16 %v300_v44, %v299_v43  ;;  %v301_v46 = vld [vmem:[#allocation6 + $0x30] sm:$0xff]  ;;  %v302_v47 = vld [vmem:[#allocation6 + $0x38] sm:$0xff]  ;;  %v303_v49 = vld [vmem:[#allocation6 + $0x40] sm:$0xff] }
  0x62   :  { %722 = vmatpush3.bf16.msra.mxu1 %v721_v13  ;;  %v741_v48 = vpack.c.bf16 %v302_v47, %v301_v46  ;;  %v304_v50 = vld [vmem:[#allocation6 + $0x48] sm:$0xff]  ;;  %v305_v52 = vld [vmem:[#allocation6 + $0x50] sm:$0xff]  ;;  %v306_v53 = vld [vmem:[#allocation6 + $0x58] sm:$0xff] }
  0x63   :  { %724 = vmatprep.subr.bf16.mxu1 %v723_v18  ;;  %v744_v51 = vpack.c.bf16 %v304_v50, %v303_v49  ;;  %v747_v54 = vpack.c.bf16 %v306_v53, %v305_v52  ;;  %v307_v55 = vld [vmem:[#allocation6 + $0x60] sm:$0xff]  ;;  %v308_v56 = vld [vmem:[#allocation6 + $0x68] sm:$0xff]  ;;  %v309_v58 = vld [vmem:[#allocation6 + $0x70] sm:$0xff] }
  0x64   :  { %694 = vmatpush3.bf16.msra.mxu0 %v693_v24  ;;  %v750_v57 = vpack.c.bf16 %v308_v56, %v307_v55  ;;  %v310_v59 = vld [vmem:[#allocation6 + $0x78] sm:$0xff]  ;;  %v389_v62 = vld [vmem:[#allocation7] sm:$0xff]  ;;  %v390_v63 = vld [vmem:[#allocation7 + $0x8] sm:$0xff] }
  0x65   :  { %696 = vmatprep.subr.bf16.mxu0 %v695_v26  ;;  %v753_v60 = vpack.c.bf16 %v310_v59, %v309_v58  ;;  %v391_v0 = vld [vmem:[#allocation7 + $0x10] sm:$0xff]  ;;  %v756_v1 = vpack.c.bf16 %v390_v63, %v389_v62  ;;  %v392_v2 = vld [vmem:[#allocation7 + $0x18] sm:$0xff]  ;;  %v393_v4 = vld [vmem:[#allocation7 + $0x20] sm:$0xff] }
  0x66   :  { %726 = vmatpush3.bf16.msra.mxu1 %v725_v25  ;;  %v759_v3 = vpack.c.bf16 %v392_v2, %v391_v0  ;;  %v394_v5 = vld [vmem:[#allocation7 + $0x28] sm:$0xff]  ;;  %v395_v7 = vld [vmem:[#allocation7 + $0x30] sm:$0xff]  ;;  %v396_v8 = vld [vmem:[#allocation7 + $0x38] sm:$0xff] }
  0x67   :  { %728 = vmatprep.subr.bf16.mxu1 %v727_v29  ;;  %v762_v6 = vpack.c.bf16 %v394_v5, %v393_v4  ;;  %v765_v9 = vpack.c.bf16 %v396_v8, %v395_v7  ;;  %v397_v10 = vld [vmem:[#allocation7 + $0x40] sm:$0xff]  ;;  %v398_v11 = vld [vmem:[#allocation7 + $0x48] sm:$0xff]  ;;  %v399_v13 = vld [vmem:[#allocation7 + $0x50] sm:$0xff] }
  0x68   :  { %698 = vmatpush3.bf16.msra.mxu0 %v697_v32  ;;  %v768_v12 = vpack.c.bf16 %v398_v11, %v397_v10  ;;  %v400_v14 = vld [vmem:[#allocation7 + $0x58] sm:$0xff]  ;;  %v401_v16 = vld [vmem:[#allocation7 + $0x60] sm:$0xff]  ;;  %v402_v17 = vld [vmem:[#allocation7 + $0x68] sm:$0xff] }
  0x69   :  { %731 = vmatprep.subr.bf16.mxu0 %v888_v39  ;;  %v771_v15 = vpack.c.bf16 %v400_v14, %v399_v13  ;;  %v774_v18 = vpack.c.bf16 %v402_v17, %v401_v16  ;;  %v490_v20 = vld [vmem:[%s1018_s2] ss:$0 sm:$0xff]  ;;  %v403_v29 = vld [vmem:[#allocation7 + $0x70] sm:$0xff] }
  0x6a   :  { %730 = vmatpush3.bf16.msra.mxu1 %v729_v33  ;;  %v404_v30 = vld [vmem:[#allocation7 + $0x78] sm:$0xff] }
  0x6b   :  { %755 = vmatprep.subr.bf16.mxu1 %v888_v39  ;;  %219 = vmatmul.mubr.f32.vlgmr.msra.gmra.mrb[0].mxu0 %v79_v36  ;;  %v777_v31 = vpack.c.bf16 %v404_v30, %v403_v29  ;;  %v491_v32 = vld [vmem:[%s1020_s4] ss:$0 sm:$0xff] }
  0x6c   :  { %733 = vmatpush3.bf16.msra.mxu0 %v732_v37  ;;  %629 = vmatprep.mubr.msk.f32.mxu0 %vm889_vm0, %v890_v61  ;;  %v492_v37 = vld [vmem:[%s1022_s6] ss:$0 sm:$0xff] }
  0x6d   :  { %289 = vmatmul.mubr.f32.vlgmr.msra.gmra.mrb[0].mxu1 %v81_v38  ;;  %734 = vmatprep.subr.bf16.mxu0 %v888_v39 }
  0x6e   :  { %664 = vmatprep.mubr.msk.f32.mxu1 %vm889_vm0, %v890_v61  ;;  %757 = vmatpush3.bf16.msra.mxu1 %v756_v1 }
  0x6f   :  { %758 = vmatprep.subr.bf16.mxu1 %v888_v39 }
  0x70   :  { %736 = vmatpush3.bf16.msra.mxu0 %v735_v42 }
  0x71   :  { %737 = vmatprep.subr.bf16.mxu0 %v888_v39 }
  0x72   :  { %760 = vmatpush3.bf16.msra.mxu1 %v759_v3 }
  0x73   :  { %761 = vmatprep.subr.bf16.mxu1 %v888_v39 }
  0x74   :  { %739 = vmatpush3.bf16.msra.mxu0 %v738_v45 }
  0x75   :  { %740 = vmatprep.subr.bf16.mxu0 %v888_v39 }
  0x76   :  { %763 = vmatpush3.bf16.msra.mxu1 %v762_v6 }
  0x77   :  { %764 = vmatprep.subr.bf16.mxu1 %v888_v39 }
  0x78   :  { %742 = vmatpush3.bf16.msra.mxu0 %v741_v48 }
  0x79   :  { %743 = vmatprep.subr.bf16.mxu0 %v888_v39 }
  0x7a   :  { %766 = vmatpush3.bf16.msra.mxu1 %v765_v9 }
  0x7b   :  { %767 = vmatprep.subr.bf16.mxu1 %v888_v39 }
  0x7c   :  { %745 = vmatpush3.bf16.msra.mxu0 %v744_v51 }
  0x7d   :  { %746 = vmatprep.subr.bf16.mxu0 %v888_v39 }
  0x7e   :  { %769 = vmatpush3.bf16.msra.mxu1 %v768_v12 }
  0x7f   :  { %770 = vmatprep.subr.bf16.mxu1 %v888_v39 }
  0x80   :  { %748 = vmatpush3.bf16.msra.mxu0 %v747_v54 }
  0x81   :  { %749 = vmatprep.subr.bf16.mxu0 %v888_v39 }
  0x82   :  { %772 = vmatpush3.bf16.msra.mxu1 %v771_v15 }
  0x83   :  { %773 = vmatprep.subr.bf16.mxu1 %v888_v39 }
  0x84   :  { %751 = vmatpush3.bf16.msra.mxu0 %v750_v57 }
  0x85   :  { %752 = vmatprep.subr.bf16.mxu0 %v888_v39 }
  0x86   :  { %775 = vmatpush3.bf16.msra.mxu1 %v774_v18 }
  0x87   :  { %776 = vmatprep.subr.bf16.mxu1 %v888_v39 }
  0x88   :  { %754 = vmatpush3.bf16.msra.mxu0 %v753_v60 }
  0x8a   :  { %778 = vmatpush3.bf16.msra.mxu1 %v777_v31 }
 0x13e   :  { %v525_v19 = vpop.f32.mrb[0].mxu0 }
 0x13f   :  { %v526_v21 = vpop.f32.mrb[1].mxu0 }
 0x140   :  { %v560_v22 = vpop.f32.mrb[0].mxu1  ;;  %v527_v23 = vadd.f32 %v526_v21, %v525_v19 }
 0x141   :  { %v561_v24 = vpop.f32.mrb[1].mxu1 }
 0x142   :  { %v562_v25 = vadd.f32 %v561_v24, %v560_v22  ;;  %v221_v26 = vadd.f32 %v527_v23, %v490_v20 }
 0x144   :  { %v291_v27 = vadd.f32 %v562_v25, %v221_v26 }
 0x146   :  { %v294_v28 = vmax.f32 %v291_v27, 0.0 }
 0x148   :  { %630 = vmatmul.mubr.f32.vlgmr.msra.gmra.mrb[2].mxu0 %v294_v28 }
 0x21b   :  { %v384_v33 = vpop.f32.mrb[2].mxu0 }
 0x21c   :  { %v385_v34 = vadd.f32 %v491_v32, %v384_v33  ;;  %v631_v35 = vpop.f32.mrb[3].mxu0 }
 0x21e   :  { %v388_v36 = vmax.f32 %v385_v34, 0.0 }
 0x220   :  { %665 = vmatmul.mubr.f32.vlgmr.msra.gmra.mrb[2].mxu1 %v388_v36 }
 0x2f3   :  { %v478_v38 = vpop.f32.mrb[2].mxu1 }
 0x2f4   :  { %v479_v39 = vadd.f32 %v492_v37, %v478_v38  ;;  %v666_v40 = vpop.f32.mrb[3].mxu1 }
 0x2f6   :  { %482 = vst [vmem:[%s1023_s7] sm:$0xff] %v479_v39 }
 0x2f7   :  { %487 = vsyncpa [#allocation3], 1 }
 0x2f8   :  { %488 = vsyncpa [#allocation5], 1 }
 0x2f9   :  { %489 = vsyncpa [#allocation8], 1 }

</bundles_post_ra>
